<compile_context>
chip_gen: v7x
topology: tpu7x:2x2x1
jax: 0.10.0
libtpu: 0.0.40
codegen_flags: <defaults>
</compile_context>

<pallas_src>
import math

import jax
import jax.numpy as jnp
from jax.experimental import pallas as pl
from jax.experimental.pallas import tpu as pltpu


_INV_SQRT2 = 1.0 / math.sqrt(2.0)
_SQRT_2_OVER_PI = math.sqrt(2.0 / math.pi)


def _make_mlp_kernel(num_chunks, tc, approximate):
    """Builds the fused pointwise-conv MLP kernel for one (Cin, TS) tile."""

    def kernel(x_ref, w1_ref, b1_ref, w2_ref, b2_ref, o_ref):
        hid, _cin = w1_ref.shape
        cout = w2_ref.shape[0]

        w1 = w1_ref[...]                              # (H,   Cin) resident
        w2 = w2_ref[...]                              # (Cout, H)  resident
        # Hoist bias broadcasts out of the chunk loop (JAX does not CSE
        # broadcast_in_dim).
        b1 = jnp.broadcast_to(b1_ref[...], (hid, tc))
        b2 = jnp.broadcast_to(b2_ref[...], (cout, tc))

        def chunk(c, carry):
            off = pl.multiple_of(c * tc, tc)
            xc = x_ref[0, :, pl.ds(off, tc)]          # (Cin, TC) lane-dense
            # conv1 (1x1x1):  h = W1 @ x + b1  -> (H, TC)
            h = jnp.dot(w1, xc, preferred_element_type=jnp.float32) + b1
            if approximate:
                # tanh-approx GELU: transcendental runs on the EUP slot.
                h = 0.5 * h * (1.0 + jnp.tanh(
                    _SQRT_2_OVER_PI * (h + 0.044715 * (h * h * h))))
            else:
                # exact GELU (torch F.gelu default): erf polynomial (VALU).
                h = 0.5 * h * (1.0 + jax.lax.erf(h * _INV_SQRT2))
            # conv2 (1x1x1):  o = W2 @ h + b2  -> (Cout, TC)
            o = jnp.dot(w2, h, preferred_element_type=jnp.float32) + b2
            o_ref[0, :, pl.ds(off, tc)] = o.astype(o_ref.dtype)
            return carry

        jax.lax.fori_loop(0, num_chunks, chunk, 0, unroll=True)

    return kernel


def mlp_pallas(x_ncdhw, w1, b1, w2, b2, *, ts_max=4096, approximate=False):
    """x_ncdhw: (N, Cin, D, H, W) float32.  Returns (N, Cout, D, H, W)."""
    n, cin, d, h, w = x_ncdhw.shape
    hid, cin_w = w1.shape
    cout, hid_w = w2.shape
    assert cin == cin_w and hid == hid_w

    s = d * h * w
    x3 = x_ncdhw.reshape(n, cin, s)                   # pure reshape, no transpose

    # ---- spatial tiling ---------------------------------------------------
    # Lane-align the spatial extent.  A pad (extra pass over x / out) only
    # triggers when D*H*W is not already a multiple of 128.
    # TODO(synk): mask the ragged tail in-kernel instead of padding.
    s_pad = pl.cdiv(s, 128) * 128
    if s_pad != s:
        x3 = jnp.pad(x3, ((0, 0), (0, 0), (0, s_pad - s)))

    # Outer tile TS: <= ts_max (so v7x's 2 TCs both get grid steps), capped by
    # a hid-scaled VMEM budget (<= ~2 MiB even if the hidden chunk spills),
    # and an exact divisor of s_pad (multiple of 128) so no further padding.
    budget_cap = max(128, ((2 * 1024 * 1024) // (4 * hid)) // 128 * 128)
    cap = max(128, (min(ts_max, budget_cap, s_pad) // 128) * 128)
    ts = 128
    for t in range(cap, 127, -128):
        if s_pad % t == 0:
            ts = t
            break

    # Inner lane chunk TC: keep the (hid, TC) f32 hidden chunk at ~16 vregs
    # so the dot -> GELU -> dot chain lives in registers.
    tc_cap = max(128, min(ts, 512, ((16 * 1024) // max(hid, 1)) // 128 * 128))
    tc = 128
    for t in range(tc_cap, 127, -128):
        if ts % t == 0:
            tc = t
            break
    num_chunks = ts // tc

    grid = (n, s_pad // ts)

    b1_2d = b1.reshape(hid, 1)                        # lane-broadcast in-kernel
    b2_2d = b2.reshape(cout, 1)

    # ---- advisory cost estimate -------------------------------------------
    m = n * s_pad
    cost = pl.CostEstimate(
        flops=2 * m * (cin * hid + hid * cout),
        # exact erf lowers to a VALU polynomial, not an EUP transcendental.
        transcendentals=(m * hid) if approximate else 0,
        bytes_accessed=4 * (m * (cin + cout) + hid * cin + cout * hid + hid + cout),
    )

    # ---- explicit VMEM budget ----------------------------------------------
    vmem_bytes = (
        2 * 2 * (cin + cout) * ts * 4                         # dbl-buffered I/O
        + 2 * (hid * cin + cout * hid + hid + cout) * 4       # resident weights
        + 4 * hid * tc * 4                                    # chain temps if spilled
    )
    vmem_limit = int(min(64 * 1024 * 1024, max(32 * 1024 * 1024, 4 * vmem_bytes)))

    kernel = _make_mlp_kernel(num_chunks, tc, approximate)

    out3 = pl.pallas_call(
        kernel,
        out_shape=jax.ShapeDtypeStruct((n, cout, s_pad), x_ncdhw.dtype),
        grid_spec=pltpu.PrefetchScalarGridSpec(
            num_scalar_prefetch=0,
            grid=grid,
            in_specs=[
                pl.BlockSpec((1, cin, ts), lambda b, si: (b, 0, si)),   # x tile
                pl.BlockSpec((hid, cin), lambda b, si: (0, 0)),         # W1 (full)
                pl.BlockSpec((hid, 1), lambda b, si: (0, 0)),           # b1
                pl.BlockSpec((cout, hid), lambda b, si: (0, 0)),        # W2 (full)
                pl.BlockSpec((cout, 1), lambda b, si: (0, 0)),          # b2
            ],
            out_specs=pl.BlockSpec((1, cout, ts), lambda b, si: (b, 0, si)),
        ),
        compiler_params=pltpu.CompilerParams(
            dimension_semantics=("parallel", "parallel"),
            vmem_limit_bytes=vmem_limit,
        ),
        cost_estimate=cost,
    )(x3, w1, b1_2d, w2, b2_2d)

    if s_pad != s:
        out3 = out3[:, :, :s]
    return out3.reshape(n, cout, d, h, w)


def mlp_reference(x_ncdhw, w1, b1, w2, b2, *, approximate=False):
    """Plain-JAX reference of the same forward pass (1x1x1 Conv3d == pointwise)."""
    h = jnp.einsum("ncdhw,oc->nodhw", x_ncdhw, w1) + b1[None, :, None, None, None]
    if approximate:
        h = 0.5 * h * (1.0 + jnp.tanh(_SQRT_2_OVER_PI * (h + 0.044715 * h ** 3)))
    else:
        h = 0.5 * h * (1.0 + jax.lax.erf(h * _INV_SQRT2))
    o = jnp.einsum("ncdhw,oc->nodhw", h, w2) + b2[None, :, None, None, None]
    return o


if __name__ == "__main__":
    # Module config (small, FNO-style): kernel_size = 1.
    in_neurons, hidden_neurons, out_neurons = 4, 32, 4
    N, D, H, W = 2, 4, 8, 8   # S = D*H*W = 256 voxels per batch element

    key = jax.random.PRNGKey(0)
    kx, kw1, kb1, kw2, kb2 = jax.random.split(key, 5)

    x = jax.random.normal(kx, (N, in_neurons, D, H, W), dtype=jnp.float32)

    # Deterministic parameter init (PyTorch Conv3d-like uniform fan-in scaling).
    bound1 = 1.0 / math.sqrt(in_neurons)        # fan_in = Cin * 1*1*1
    bound2 = 1.0 / math.sqrt(hidden_neurons)
    w1 = jax.random.uniform(kw1, (hidden_neurons, in_neurons), jnp.float32,
                            -bound1, bound1)
    b1 = jax.random.uniform(kb1, (hidden_neurons,), jnp.float32, -bound1, bound1)
    w2 = jax.random.uniform(kw2, (out_neurons, hidden_neurons), jnp.float32,
                            -bound2, bound2)
    b2 = jax.random.uniform(kb2, (out_neurons,), jnp.float32, -bound2, bound2)

    # Exact-erf GELU path (matches torch F.gelu default semantics).
    out = jax.block_until_ready(mlp_pallas(x, w1, b1, w2, b2))
    ref = mlp_reference(x, w1, b1, w2, b2)
    assert out.shape == (N, out_neurons, D, H, W), out.shape
    assert jnp.allclose(out, ref, atol=1e-5, rtol=1e-5), \
        float(jnp.max(jnp.abs(out - ref)))

    # Optional tanh-approx fast path (EUP transcendental), checked against the
    # matching tanh-approx reference.
    out_a = jax.block_until_ready(mlp_pallas(x, w1, b1, w2, b2, approximate=True))
    ref_a = mlp_reference(x, w1, b1, w2, b2, approximate=True)
    assert jnp.allclose(out_a, ref_a, atol=1e-5, rtol=1e-5), \
        float(jnp.max(jnp.abs(out_a - ref_a)))

    print("KERNEL_OK")
</pallas_src>

<mosaic_0001>
module attributes {stable_mosaic.version = 11 : i64} {
  func.func @kernel(%arg0: i32, %arg1: i32, %arg2: memref<1x4x256xf32, #tpu.memory_space<vmem>>, %arg3: memref<32x4xf32, #tpu.memory_space<vmem>>, %arg4: memref<32x1xf32, #tpu.memory_space<vmem>>, %arg5: memref<4x32xf32, #tpu.memory_space<vmem>>, %arg6: memref<4x1xf32, #tpu.memory_space<vmem>>, %arg7: memref<1x4x256xf32, #tpu.memory_space<vmem>>) attributes {dimension_semantics = [#tpu.dimension_semantics<parallel>, #tpu.dimension_semantics<parallel>], iteration_bounds = array<i64: 2, 1>, scalar_prefetch = 0 : i64, scratch_operands = 0 : i64, tpu.core_type = #tpu.core_type<tc>, window_params = [{transform_indices = @transform_0, window_bounds = array<i64: 1, 4, 256>}, {pipeline_mode = #tpu.pipeline_mode<synchronous>, transform_indices = @transform_1, window_bounds = array<i64: 32, 4>}, {pipeline_mode = #tpu.pipeline_mode<synchronous>, transform_indices = @transform_2, window_bounds = array<i64: 32, 1>}, {pipeline_mode = #tpu.pipeline_mode<synchronous>, transform_indices = @transform_3, window_bounds = array<i64: 4, 32>}, {pipeline_mode = #tpu.pipeline_mode<synchronous>, transform_indices = @transform_4, window_bounds = array<i64: 4, 1>}, {transform_indices = @transform_5, window_bounds = array<i64: 1, 4, 256>}]} {
    %c0 = arith.constant 0 : index
    %c0_0 = arith.constant 0 : index
    %0 = vector.load %arg3[%c0, %c0_0] : memref<32x4xf32, #tpu.memory_space<vmem>>, vector<32x4xf32>
    %c0_1 = arith.constant 0 : index
    %c0_2 = arith.constant 0 : index
    %1 = vector.load %arg5[%c0_1, %c0_2] : memref<4x32xf32, #tpu.memory_space<vmem>>, vector<4x32xf32>
    %c0_3 = arith.constant 0 : index
    %c0_4 = arith.constant 0 : index
    %2 = vector.load %arg4[%c0_3, %c0_4] : memref<32x1xf32, #tpu.memory_space<vmem>>, vector<32x1xf32>
    %3 = vector.shape_cast %2 : vector<32x1xf32> to vector<32x1xf32>
    %4 = vector.broadcast %3 : vector<32x1xf32> to vector<32x256xf32>
    %c0_5 = arith.constant 0 : index
    %c0_6 = arith.constant 0 : index
    %5 = vector.load %arg6[%c0_5, %c0_6] : memref<4x1xf32, #tpu.memory_space<vmem>>, vector<4x1xf32>
    %6 = vector.shape_cast %5 : vector<4x1xf32> to vector<4x1xf32>
    %7 = vector.broadcast %6 : vector<4x1xf32> to vector<4x256xf32>
    %c0_i32 = arith.constant 0 : i32
    %c256_i32 = arith.constant 256 : i32
    %8 = arith.muli %c0_i32, %c256_i32 : i32
    %9 = tpu.assume_multiple %8, 256 : i32
    %c0_7 = arith.constant 0 : index
    %c0_8 = arith.constant 0 : index
    %10 = arith.index_cast %9 : i32 to index
    %11 = vector.load %arg2[%c0_7, %c0_8, %10] : memref<1x4x256xf32, #tpu.memory_space<vmem>>, vector<1x4x256xf32>
    %12 = vector.shape_cast %11 : vector<1x4x256xf32> to vector<4x256xf32>
    %cst = arith.constant dense<0.000000e+00> : vector<32x256xf32>
    %13 = tpu.matmul %0, %12, %cst {dimension_numbers = #tpu.dot_dimension_numbers<[1], [0], [0], [1], [0, 0, 1, 1], [], []>} : vector<32x4xf32>, vector<4x256xf32>, vector<32x256xf32> -> vector<32x256xf32>
    %14 = arith.addf %13, %4 : vector<32x256xf32>
    %cst_9 = arith.constant 5.000000e-01 : f32
    %15 = vector.broadcast %cst_9 : f32 to vector<32x256xf32>
    %16 = arith.mulf %15, %14 : vector<32x256xf32>
    %cst_10 = arith.constant 0.707106769 : f32
    %17 = vector.broadcast %cst_10 : f32 to vector<32x256xf32>
    %18 = arith.mulf %14, %17 : vector<32x256xf32>
    %19 = math.erf %18 : vector<32x256xf32>
    %cst_11 = arith.constant 1.000000e+00 : f32
    %20 = vector.broadcast %cst_11 : f32 to vector<32x256xf32>
    %21 = arith.addf %20, %19 : vector<32x256xf32>
    %22 = arith.mulf %16, %21 : vector<32x256xf32>
    %cst_12 = arith.constant dense<0.000000e+00> : vector<4x256xf32>
    %23 = tpu.matmul %1, %22, %cst_12 {dimension_numbers = #tpu.dot_dimension_numbers<[1], [0], [0], [1], [0, 0, 1, 1], [], []>} : vector<4x32xf32>, vector<32x256xf32>, vector<4x256xf32> -> vector<4x256xf32>
    %24 = arith.addf %23, %7 : vector<4x256xf32>
    %c0_13 = arith.constant 0 : index
    %c0_14 = arith.constant 0 : index
    %25 = arith.index_cast %9 : i32 to index
    %26 = vector.load %arg7[%c0_13, %c0_14, %25] : memref<1x4x256xf32, #tpu.memory_space<vmem>>, vector<1x4x256xf32>
    %27 = vector.shape_cast %26 : vector<1x4x256xf32> to vector<4x256xf32>
    %28 = vector.shape_cast %24 : vector<4x256xf32> to vector<1x4x256xf32>
    tpu.vector_store %arg7[%c0_13, %c0_14, %25], %28 {strides = array<i32>} : memref<1x4x256xf32, #tpu.memory_space<vmem>>, vector<1x4x256xf32>,
    %c1_i32 = arith.constant 1 : i32
    return
  }
  func.func @transform_0(%arg0: i32, %arg1: i32) -> (i32, i32, i32) {
    %c0_i32 = arith.constant 0 : i32
    %c0_i32_0 = arith.constant 0 : i32
    return %arg0, %c0_i32, %arg1 : i32, i32, i32
  }
  func.func @transform_1(%arg0: i32, %arg1: i32) -> (i32, i32) {
    %c0_i32 = arith.constant 0 : i32
    %c0_i32_0 = arith.constant 0 : i32
    %c0_i32_1 = arith.constant 0 : i32
    return %c0_i32, %c0_i32_0 : i32, i32
  }
  func.func @transform_2(%arg0: i32, %arg1: i32) -> (i32, i32) {
    %c0_i32 = arith.constant 0 : i32
    %c0_i32_0 = arith.constant 0 : i32
    %c0_i32_1 = arith.constant 0 : i32
    return %c0_i32, %c0_i32_0 : i32, i32
  }
  func.func @transform_3(%arg0: i32, %arg1: i32) -> (i32, i32) {
    %c0_i32 = arith.constant 0 : i32
    %c0_i32_0 = arith.constant 0 : i32
    %c0_i32_1 = arith.constant 0 : i32
    return %c0_i32, %c0_i32_0 : i32, i32
  }
  func.func @transform_4(%arg0: i32, %arg1: i32) -> (i32, i32) {
    %c0_i32 = arith.constant 0 : i32
    %c0_i32_0 = arith.constant 0 : i32
    %c0_i32_1 = arith.constant 0 : i32
    return %c0_i32, %c0_i32_0 : i32, i32
  }
  func.func @transform_5(%arg0: i32, %arg1: i32) -> (i32, i32, i32) {
    %c0_i32 = arith.constant 0 : i32
    %c0_i32_0 = arith.constant 0 : i32
    return %arg0, %c0_i32, %arg1 : i32, i32, i32
  }
}

</mosaic_0001>

<bundles_post_ra>
// kernel: tpu_custom_call.1
= control target key start
LH: loop header
LB: loop body
LE: loop exit
PB: predicated region body
PF: predicated region fallthrough
CT: control target
= control target key end

     0   :  { %10 = vsyncpa [#allocation3], 0  ;;  %s973_s0 = inlined_call_operand.vmem [shape: f32[2,4,256], index: 0, kind: input, shape index: {}]   ;;  %s974_s1 = inlined_call_operand.vmem [shape: f32[32,4], index: 1, kind: input, shape index: {}]   ;;  %s975_s2 = inlined_call_operand.vmem [shape: f32[32,1], index: 2, kind: input, shape index: {}]   ;;  %s976_s3 = inlined_call_operand.vmem [shape: f32[4,32], index: 3, kind: input, shape index: {}]   ;;  %s977_s4 = inlined_call_operand.vmem [shape: f32[4,1], index: 4, kind: input, shape index: {}]   ;;  %s978_s5 = inlined_call_operand.hbm [shape: f32[2,4,256], index: 5, kind: output, shape index: {}]  }
   0x1   :  { %12 = vsyncpa [#allocation3 + $0x1], 0  ;;  %s831_s18 = smov 0   ;;  %s833_s19 = smov 0  }
   0x2   :  { %s835_s20 = smov 0   ;;  %s837_s21 = smov 0  }
   0x3   :  { %s839_s22 = smov 0   ;;  %s841_s23 = smov 0  }
   0x4 LB: > { %s612_s24 = sadd.s32 4294967295, %s796_s23   ;;  %s613_s25 = sadd.s32 4294967294, %s796_s23   ;;  %s796_s23 = sphi %s841_s23, %s18_s23   ;;  %s792_s22 = sphi %s839_s22, %s985_s22   ;;  %s788_s21 = sphi %s837_s21, %s984_s21   ;;  %s784_s20 = sphi %s835_s20, %s983_s20   ;;  %s780_s19 = sphi %s833_s19, %s982_s19   ;;  %s776_s18 = sphi %s831_s18, %s981_s18  }
   0x5   : > { %s30_s26 = sadd.s32 1, %s792_s22  ;;  %s151_s27 = sadd.s32 1, %s784_s20 }
   0x6   : > { %p32_p0 = scmp.ge.s32.totalorder %s30_s26, 2  ;;  %p161_p1 = scmp.ne.s32.totalorder %s784_s20, %s780_s19 }
   0x7   : > { %p162_p2 = scmp.eq.s32.totalorder %s612_s24, 1  ;;  %p167_p3 = scmp.ne.s32.totalorder %s780_s19, %s776_s18 }
   0x8   : > { %s987_s26 = smov (%p32_p0, %s30_s26), 0  ;;  %p168_p5 = scmp.eq.s32.totalorder %s613_s25, 1 }
   0x9   : > { %p871_p4 = por %p162_p2, %p161_p1  ;;  %s146_s29 = ssub.s32 %s792_s22, %s987_s26 }
   0xa   : > { %p616_p6 = scmp.ge.s32.totalorder %s796_s23, 1  ;;  %p149_p7 = scmp.eq.s32.totalorder %s146_s29, 0 }
   0xb   : > { %p878_p8 = por %p168_p5, %p167_p3  ;;  %p211_p9 = scmp.lt.s32.totalorder %s796_s23, 3 }
   0xc   : > { %s884_s6 = scalar_select %p149_p7, %s784_s20, %s151_s27  }
   0xd   : > { %p212_p10 = pnand %p616_p6, %p211_p9 }
   0xe   : > { %p244_p11 = scmp.lt.s32.totalorder (!%p212_p10), %s788_s21, 1  ;;  %v798_v0 = vmov (!%p212_p10), 0.0   ;;  %v259_v1 = vld [vmem:[%s975_s2] sm:$0xff] (!%p212_p10)  ;;  %v799_v2 = vmov (!%p212_p10), 0   ;;  %v261_v3 = vld [vmem:[%s975_s2 + $0x10] sm:$0xff] (!%p212_p10)  ;;  %v260_v4 = vld [vmem:[%s975_s2 + $0x8] sm:$0xff] (!%p212_p10) }
   0xf   : > { %215 = sbr.rel (%p212_p10) target bundleno = 512 (0x200), region = 40  ;;  %374 = vmatprep.mubr.f32.mxu0 (!%p212_p10), %v798_v0  ;;  %507 = vmatprep.mubr.f32.mxu1 (!%p212_p10), %v798_v0  ;;  %v262_v5 = vld [vmem:[%s975_s2 + $0x18] sm:$0xff] (!%p212_p10)  ;;  %vm305_vm0 = vcmask (!%p212_p10), 1043456   ;;  %v254_v8 = vld [vmem:[%s974_s1] sm:$0xff] (!%p212_p10)  ;;  %vm292_vm1 = vcmask (!%p212_p10), 31744   ;;  %v255_v10 = vld [vmem:[%s974_s1 + $0x8] sm:$0xff] (!%p212_p10) }
  0x10   : > { %699 = vset.pattern.permute.xlu0 (!%p212_p10), %v799_v2  ;;  %700 = vset.pattern.permute.xlu1 (!%p212_p10), %v799_v2  ;;  %v283_v9 = vld [vmem:[%s977_s4] sm:$0xf] (!%p212_p10)  ;;  %v256_v11 = vld [vmem:[%s974_s1 + $0x10] sm:$0xff] (!%p212_p10)  ;;  %v257_v12 = vld [vmem:[%s974_s1 + $0x18] sm:$0xff] (!%p212_p10)  ;;  %vm439_vm2 = vcmask (!%p212_p10), 261120   ;;  %s240_s17 = sand.u32 (!%p212_p10), 1, %s780_s19  }
  0x11   : > { %265 = vperm.xlu0 (!%p212_p10), %699, %v259_v1   ;;  %275 = vperm.xlu1 (!%p212_p10), %700, %v261_v3   ;;  %s617_s24 = sshll.u32 (!%p212_p10), %s240_s17, 3  ;;  %s520_s10 = scalar_lea.sflag (!%p212_p10), [#allocation3], %s240_s17 }
  0x12   : > { %s242_s27 = scalar_lea.vmem (!%p212_p10), [#allocation2], %s617_s24 }
  0x13   : > { %s536_s29 = sshll.u32 (!%p212_p10), %s242_s27, 4  ;;  %s928_s29 = int_to_ptr.vmem [resolvable:$true] %s536_s29 }
  0x14   : > { %s718_s11 = scalar_lea.vmem (!%p212_p10), %s928_s29, 128 }
  0x15   : > { %270 = vperm.xlu0 (!%p212_p10), %699, %v260_v4   ;;  %280 = vperm.xlu1 (!%p212_p10), %700, %v262_v5   ;;  %p719_p12 = scmp.ne.s32.totalorder (!%p212_p10), %s928_s29, %s718_s11 }
  0x16   : > { %s245_s9 = scalar_select %p244_p11, %s788_s21, 1 }
  0x17   : > { %p720_p13 = pnand %p719_p12, %p871_p4 }
  0x18   : > { %s632_s12 = sshll.u32 %s245_s9, 3 }
  0x19   : > { %s251_s25 = scalar_lea.vmem %s973_s0, %s632_s12  ;;  %286 = vperm.xlu0 %699, %v283_v9   ;;  %p721_p0 = pneg %p720_p13 }
  0x1a   : > { %v289_v6 = vld [vmem:[%s251_s25] sm:$0xff]  ;;  %s633_s25 = sshll.u32 %s788_s21, 7  ;;  %s800_s21 = smov [#allocation2]  }
  0x1b   : > { %v291_v7 = vcombine.high %v289_v6, %v289_v6  ;;  %s926_s9 = scalar_lea.hbm %s978_s5, %s633_s25  ;;  %s722_s12 = sshll.u32 %s800_s21, 4  ;;  %s723_s12 = int_to_ptr.vmem [resolvable:$false] %s722_s12 }
  0x1c   : > { %s724_s13 = scalar_lea.vmem %s723_s12, 256  ;;  %p725_p1 = scmp.lt.s32.totalorder %s928_s29, %s723_s12 }
  0x1d   : > { %620 = vmatprep.subr.msk.mxu0 %vm305_vm0, %v291_v7  ;;  %p726_p2 = scmp.lt.s32.totalorder %s724_s13, %s718_s11 }
  0x1e   : > { %621 = vmatpush1.msk.msra.mxu0 %vm305_vm0, %v289_v6 }
  0x1f   : > { %622 = vmatmul.mubr.msk.f32.vlgmr.msra.gmra.mrb[0].mxu0 %vm292_vm1, %v254_v8  ;;  %p727_p3 = por %p726_p2, %p725_p1 }
  0x20   : > { %380 = vmatprep.mubr.f32.mxu0 %v798_v0 }
  0x21   : > { %p728_p5 = pnand %p727_p3, %p721_p0 }
  0x23   : > { %623 = vmatmul.mubr.msk.f32.gmra.mrb[2].mxu0 %vm292_vm1, %v255_v10 }
  0x24   : > { %386 = vmatprep.mubr.f32.mxu0 %v798_v0 }
  0x27   : > { %624 = vmatmul.mubr.msk.f32.gmra.mrb[4].mxu0 %vm292_vm1, %v256_v11 }
  0x28   : > { %392 = vmatprep.mubr.f32.mxu0 %v798_v0 }
  0x2b   : > { %625 = vmatmul.mubr.msk.f32.gmra.mrb[6].mxu0 %vm292_vm1, %v257_v12 }
  0x90   : > { %v266_v13 = vpop.permute.xlu0 %265  ;;  %v276_v24 = vpop.permute.xlu1 %275 }
  0x94   : > { %v271_v19 = vpop.permute.xlu0 %270  ;;  %v281_v33 = vpop.permute.xlu1 %280 }
  0xf2   : > { %v376_v14 = vpop.f32.mrb[0].mxu0 }
  0xf3   : > { %v377_v15 = vadd.f32 %v376_v14, %v266_v13  ;;  %v378_v16 = vpop.f32.mrb[1].mxu0  ;;  %v287_v14 = vpop.permute.xlu0 %286 }
  0xf4   : > { %v379_v17 = vadd.f32 %v378_v16, %v266_v13  ;;  %v258_v13 = vld [vmem:[%s976_s3] sm:$0xf] }
  0xf5   : > { %v407_v18 = vmul.f32 0.70710677, %v377_v15  ;;  %v399_v47 = vmul.f32 0.5, %v377_v15 }
  0xf6   : > { %v408_v20 = vmul.f32 0.70710677, %v379_v17  ;;  %v382_v21 = vpop.f32.mrb[2].mxu0  ;;  %v400_v50 = vmul.f32 0.5, %v379_v17 }
  0xf7   : > { %702 = verf.f32 %v407_v18  ;;  %v383_v22 = vadd.f32 %v382_v21, %v271_v19  ;;  %v384_v23 = vpop.f32.mrb[3].mxu0 }
  0xf8   : > { %704 = verf.f32 %v408_v20  ;;  %v385_v25 = vadd.f32 %v384_v23, %v271_v19 }
  0xf9   : > { %v409_v26 = vmul.f32 0.70710677, %v383_v22  ;;  %v401_v48 = vmul.f32 0.5, %v383_v22 }
  0xfa   : > { %v410_v27 = vmul.f32 0.70710677, %v385_v25  ;;  %v388_v28 = vpop.f32.mrb[4].mxu0  ;;  %v402_v51 = vmul.f32 0.5, %v385_v25 }
  0xfb   : > { %706 = verf.f32 %v409_v26  ;;  %v389_v29 = vadd.f32 %v388_v28, %v276_v24  ;;  %v390_v30 = vpop.f32.mrb[5].mxu0 }
  0xfc   : > { %708 = verf.f32 %v410_v27  ;;  %v391_v31 = vadd.f32 %v390_v30, %v276_v24 }
  0xfd   : > { %v411_v32 = vmul.f32 0.70710677, %v389_v29  ;;  %v403_v1 = vmul.f32 0.5, %v389_v29 }
  0xfe   : > { %v412_v34 = vmul.f32 0.70710677, %v391_v31  ;;  %v394_v35 = vpop.f32.mrb[6].mxu0  ;;  %v404_v4 = vmul.f32 0.5, %v391_v31 }
  0xff   : > { %710 = verf.f32 %v411_v32  ;;  %v395_v36 = vadd.f32 %v394_v35, %v281_v33  ;;  %v396_v37 = vpop.f32.mrb[7].mxu0 }
 0x100   : > { %712 = verf.f32 %v412_v34  ;;  %v397_v38 = vadd.f32 %v396_v37, %v281_v33 }
 0x101   : > { %v703_v39 = vpop.eup %702  ;;  %v413_v40 = vmul.f32 0.70710677, %v395_v36  ;;  %v405_v2 = vmul.f32 0.5, %v395_v36 }
 0x102   : > { %v705_v41 = vpop.eup %704  ;;  %v414_v42 = vmul.f32 0.70710677, %v397_v38  ;;  %v423_v43 = vadd.f32 1.0, %v703_v39  ;;  %v406_v5 = vmul.f32 0.5, %v397_v38 }
 0x103   : > { %714 = verf.f32 %v413_v40  ;;  %v424_v45 = vadd.f32 1.0, %v705_v41 }
 0x104   : > { %716 = verf.f32 %v414_v42  ;;  %v431_v53 = vmul.f32 %v423_v43, %v399_v47 }
 0x105   : > { %v707_v44 = vpop.eup %706  ;;  %v432_v56 = vmul.f32 %v424_v45, %v400_v50 }
 0x106   : > { %v709_v46 = vpop.eup %708  ;;  %v425_v49 = vadd.f32 1.0, %v707_v44 }
 0x107   : > { %v426_v52 = vadd.f32 1.0, %v709_v46 }
 0x108   : > { %v433_v54 = vmul.f32 %v425_v49, %v401_v48 }
 0x109   : > { %v711_v55 = vpop.eup %710  ;;  %v434_v57 = vmul.f32 %v426_v52, %v402_v51 }
 0x10a   : > { %v713_v58 = vpop.eup %712  ;;  %v636_v59 = vpack.c.bf16 %v433_v54, %v431_v53  ;;  %v427_v61 = vadd.f32 1.0, %v711_v55 }
 0x10b   : > { %v634_v60 = vpack.c.bf16 %v434_v57, %v432_v56  ;;  %v428_v63 = vadd.f32 1.0, %v713_v58 }
 0x10c   : > { %v435_v7 = vmul.f32 %v427_v61, %v403_v1 }
 0x10d   : > { %v715_v62 = vpop.eup %714  ;;  %635 = vmatprep.subr.bf16.mxu1 %v634_v60  ;;  %v436_v9 = vmul.f32 %v428_v63, %v404_v4 }
 0x10e   : > { %v717_v0 = vpop.eup %716  ;;  %v429_v3 = vadd.f32 1.0, %v715_v62  ;;  %637 = vmatpush1.bf16.msra.mxu1 %v636_v59 }
 0x10f   : > { %v430_v6 = vadd.f32 1.0, %v717_v0 }
 0x110   : > { %v437_v8 = vmul.f32 %v429_v3, %v405_v2 }
 0x111   : > { %v438_v10 = vmul.f32 %v430_v6, %v406_v5 }
 0x112   : > { %v640_v11 = vpack.c.bf16 %v437_v8, %v435_v7 }
 0x113   : > { %v638_v12 = vpack.c.bf16 %v438_v10, %v436_v9 }
 0x115   : > { %639 = vmatprep.subr.bf16.mxu1 %v638_v12 }
 0x116   : > { %641 = vmatpush1.bf16.msra.mxu1 %v640_v11 }
 0x119   : > { %626 = vmatmul.mubr.msk.f32.vlgmr.msra.gmra.mrb[0].mxu1 %vm439_vm2, %v258_v13 }
 0x1ec   : > { %v509_v15 = vpop.f32.mrb[0].mxu1 }
 0x1ed   : > { %v510_v16 = vadd.f32 %v509_v15, %v287_v14  ;;  %v511_v17 = vpop.f32.mrb[1].mxu1 }
 0x1ee   : > { %v512_v18 = vadd.f32 %v511_v17, %v287_v14 }
 0x1f0   : > { %v516_v19 = vcombine.low %v510_v16, %v512_v18 }
 0x1f2   : > { %518 = vst [vmem:[%s242_s27] sm:$0xff] %v516_v19 }
 0x1f3   : > { %731 = shalt.err (!%p728_p5)
}
 0x1f4   : > { %s732_s14 = scalar_lea.hbm %s926_s9, 128  ;;  %s736_s17 = scalar_lea.hbm %s978_s5, 256 }
 0x1f5   : > { %p733_p6 = scmp.ne.s32.totalorder %s926_s9, %s732_s14  ;;  %p737_p10 = scmp.lt.u32.totalorder %s926_s9, %s978_s5 }
 0x1f6   : > { %p738_p11 = scmp.lt.u32.totalorder %s736_s17, %s732_s14  ;;  %p740_p13 = scmp.lt.u32.totalorder %s732_s14, %s926_s9 }
 0x1f7   : > { %p734_p7 = pnand %p733_p6, %p871_p4 }
 0x1f8   : > { %p739_p12 = por %p738_p11, %p737_p10 }
 0x1f9   : > { %p735_p9 = pneg %p734_p7 }
 0x1fa   : > { %p741_p0 = por %p740_p13, %p739_p12 }
 0x1fc   : > { %p742_p1 = pnand %p741_p0, %p735_p9 }
 0x1fe   : > { %745 = shalt.err (!%p742_p1)
}
 0x1ff   : > { %642 = dma.vmem_to_hbm [thread:$0]  (%p871_p4), %s928_s29, 128, %s926_s9, %s520_s10  }
 0x200 PF: > { %p648_p2 = scmp.ge.s32.totalorder %s796_s23, 2  ;;  %s548_s27 = sand.u32 1, %s776_s18  }
 0x201   : > { %s549_s7 = scalar_lea.sflag [#allocation3], %s548_s27 }
 0x202   : > { %p645_p3 = pnand %p648_p2, %p878_p8 }
 0x204   : > { %771 = dma.done.wait (!%p645_p3), %s549_s7, 128  }
 0x205   : > { %773 = vsyncadd (!%p645_p3), %s549_s7, 4294967168  ;;  %s18_s23 = sadd.s32 1, %s796_s23   ;;  %s981_s18 = smov %s780_s19 }
 0x206   : > { %p15_p5 = scmp.ge.s32.totalorder %s18_s23, 4   ;;  %s982_s19 = smov %s784_s20 }
 0x207   : > { %s983_s20 = smov %s884_s6  ;;  %s984_s21 = smov %s792_s22 }
 0x208   : > { %s985_s22 = smov %s987_s26  ;;  %17 = sbr.rel (!%p15_p5) target bundleno = 4 (0x4), region = 75 }
 0x20f   :  { %554 = vsyncpa [#allocation3], 1 }
 0x210   :  { %556 = vsyncpa [#allocation3 + $0x1], 1 }

</bundles_post_ra>
